<compile_context>
chip_gen: v7x
topology: tpu7x:2x2x1
jax: 0.10.0
libtpu: 0.0.40
codegen_flags: <defaults>
</compile_context>

<pallas_src>
import jax
import jax.numpy as jnp
from jax.experimental import pallas as pl
from jax.experimental.pallas import tpu as pltpu

_LANES = 128


def _sublane_multiple(dtype) -> int:
    """Minimum sublane multiple for TPU tiling, per dtype packing."""
    itemsize = jnp.dtype(dtype).itemsize
    if itemsize >= 4:
        return 8
    if itemsize == 2:
        return 16
    return 32


def _round_up(n: int, m: int) -> int:
    return ((n + m - 1) // m) * m


def _make_rezero_kernel(fn):
    """Pallas kernel body: out = fn(x) * g, g is a 32-bit scalar in SMEM."""

    def kernel(g_ref, x_ref, o_ref):
        g = g_ref[0].astype(o_ref.dtype)      # scalar cast only; no tile promotion
        o_ref[...] = (fn(x_ref[...]) * g).astype(o_ref.dtype)

    return kernel


def rezero_apply(x, g, fn=lambda v: v, *, block_bytes=2 << 20):
    """Rezero forward: fn(x) * g, with the elementwise fn + multiply in Pallas.

    x  : arbitrary-shape float array (histoGAN uses NCHW activations)
    g  : scalar (shape (1,) or ()) parameter, init 0 like nn.Parameter(torch.zeros(1))
    fn : elementwise, shape-preserving function fused into the kernel
    block_bytes : per-block VMEM footprint target (~2 MiB keeps 4 double-buffered
                  blocks at 8 MiB, safe on v5e/v6e/v7x without raising vmem limits)
    """
    orig_shape = x.shape
    total = x.size
    itemsize = jnp.dtype(x.dtype).itemsize
    sub = _sublane_multiple(x.dtype)

    # Flatten to a lane-dense slab, padding the element count to a lane multiple.
    rows = pl.cdiv(total, _LANES)
    padded_elems_to_lane = rows * _LANES

    # Largest row block within the VMEM budget, multiple of the sublane quantum.
    max_rb = max(sub, (block_bytes // (_LANES * itemsize)) // sub * sub)
    rb = min(max_rb, _round_up(rows, sub))

    # Pad rows up to a multiple of rb so every grid step sees a full block.
    padded_rows = _round_up(rows, rb)
    padded_total = padded_rows * _LANES

    x_flat = x.reshape(-1)
    if padded_total != total:
        x_flat = jnp.pad(x_flat, (0, padded_total - total))
    x2d = x_flat.reshape(padded_rows, _LANES)

    grid = (padded_rows // rb,)

    g_smem = jnp.asarray(g).reshape(-1)[:1].astype(jnp.float32)

    out2d = pl.pallas_call(
        _make_rezero_kernel(fn),
        out_shape=jax.ShapeDtypeStruct((padded_rows, _LANES), x.dtype),
        grid_spec=pltpu.PrefetchScalarGridSpec(
            num_scalar_prefetch=0,
            grid=grid,
            in_specs=[
                # scalar rezero gate lives in SMEM, same block every grid step
                pl.BlockSpec(memory_space=pltpu.SMEM),
                # large lane-dense tile of the flattened input
                pl.BlockSpec((rb, _LANES), lambda i: (i, 0)),
            ],
            out_specs=pl.BlockSpec((rb, _LANES), lambda i: (i, 0)),
        ),
        compiler_params=pltpu.CompilerParams(
            dimension_semantics=("parallel",),
        ),
        cost_estimate=pl.CostEstimate(
            flops=int(total),
            transcendentals=0,
            bytes_accessed=int(2 * total * itemsize),
        ),
    )(g_smem, x2d)

    out_flat = out2d.reshape(-1)
    if padded_total != total:
        out_flat = out_flat[:total]
    return out_flat.reshape(orig_shape)


if __name__ == "__main__":
    key = jax.random.PRNGKey(0)
    B, C, H, W = 2, 4, 16, 16                     # NCHW, matches histoGAN conv layout
    x = jax.random.normal(key, (B, C, H, W), dtype=jnp.float32)

    # Parameters: g = nn.Parameter(torch.zeros(1))  -> deterministic zeros init
    g = jnp.zeros((1,), dtype=jnp.float32)

    # fn: identity here (Rezero is generic); fused elementwise into the kernel.
    fn = lambda v: v

    out = jax.block_until_ready(rezero_apply(x, g, fn))
    ref = fn(x) * g[0]
    assert out.shape == x.shape and out.dtype == x.dtype
    assert jnp.allclose(out, ref, atol=1e-6), "mismatch vs reference (g=0)"

    # Nonzero gate so the kernel isn't trivially zero.
    g2 = jnp.array([0.37], dtype=jnp.float32)
    out2 = jax.block_until_ready(rezero_apply(x, g2, fn))
    assert jnp.allclose(out2, fn(x) * g2[0], atol=1e-6), "mismatch vs reference (g!=0)"

    # bf16 path (dtype-aware sublane multiple) and a non-multiple-of-128 shape.
    xb = jax.random.normal(jax.random.PRNGKey(1), (2, 3, 15, 15), dtype=jnp.bfloat16)
    outb = jax.block_until_ready(rezero_apply(xb, g2, fn))
    refb = (xb.astype(jnp.float32) * 0.37).astype(jnp.bfloat16)
    assert outb.shape == xb.shape and outb.dtype == xb.dtype
    assert jnp.allclose(outb.astype(jnp.float32), refb.astype(jnp.float32),
                        atol=1e-2), "mismatch vs reference (bf16)"

    print("KERNEL_OK")
</pallas_src>

<mosaic_0001>
module attributes {stable_mosaic.version = 11 : i64} {
  func.func @kernel(%arg0: i32, %arg1: memref<1xf32, #tpu.memory_space<smem>>, %arg2: memref<16x128xf32, #tpu.memory_space<vmem>>, %arg3: memref<16x128xf32, #tpu.memory_space<vmem>>) attributes {dimension_semantics = [#tpu.dimension_semantics<parallel>], iteration_bounds = array<i64: 1>, scalar_prefetch = 0 : i64, scratch_operands = 0 : i64, tpu.core_type = #tpu.core_type<tc>, window_params = [{transform_indices = @transform_0, window_bounds = array<i64: 1>}, {transform_indices = @transform_1, window_bounds = array<i64: 16, 128>}, {transform_indices = @transform_2, window_bounds = array<i64: 16, 128>}]} {
    %c0 = arith.constant 0 : index
    %0 = memref.load %arg1[%c0] : memref<1xf32, #tpu.memory_space<smem>>
    %c0_0 = arith.constant 0 : index
    %c0_1 = arith.constant 0 : index
    %1 = vector.load %arg2[%c0_0, %c0_1] : memref<16x128xf32, #tpu.memory_space<vmem>>, vector<16x128xf32>
    %2 = vector.broadcast %0 : f32 to vector<16x128xf32>
    %3 = arith.mulf %1, %2 : vector<16x128xf32>
    %c0_2 = arith.constant 0 : index
    %c0_3 = arith.constant 0 : index
    %4 = vector.load %arg3[%c0_2, %c0_3] : memref<16x128xf32, #tpu.memory_space<vmem>>, vector<16x128xf32>
    tpu.vector_store %arg3[%c0_2, %c0_3], %3 {strides = array<i32>} : memref<16x128xf32, #tpu.memory_space<vmem>>, vector<16x128xf32>,
    return
  }
  func.func @transform_0(%arg0: i32) -> i32 {
    %c0_i32 = arith.constant 0 : i32
    %c0_i32_0 = arith.constant 0 : i32
    return %c0_i32 : i32
  }
  func.func @transform_1(%arg0: i32) -> (i32, i32) {
    %c0_i32 = arith.constant 0 : i32
    %c0_i32_0 = arith.constant 0 : i32
    return %arg0, %c0_i32 : i32, i32
  }
  func.func @transform_2(%arg0: i32) -> (i32, i32) {
    %c0_i32 = arith.constant 0 : i32
    %c0_i32_0 = arith.constant 0 : i32
    return %arg0, %c0_i32 : i32, i32
  }
}

</mosaic_0001>

<bundles_post_ra>
// kernel: tpu_custom_call.1
= control target key start
LH: loop header
LB: loop body
LE: loop exit
PB: predicated region body
PF: predicated region fallthrough
CT: control target
= control target key end

     0   :  { %8 = vsyncpa [#allocation4], 0  ;;  %s156_s0 = inlined_call_operand.<no memory space> [shape: f32[1], index: 0, kind: input, shape index: {}]   ;;  %s157_s1 = inlined_call_operand.hbm [shape: f32[16,128], index: 1, kind: input, shape index: {}]   ;;  %s158_s2 = inlined_call_operand.hbm [shape: f32[16,128], index: 2, kind: output, shape index: {}]  }
   0x1   :  { %9 = vsyncpa [#allocation5], 0  ;;  %s104_s9 = smov [#allocation3]   ;;  %s56_s13 = scalar_lea.hbm %s157_s1, 256 }
   0x2   :  { %s17_s10 = sshll.u32 %s104_s9, 4  ;;  %p57_p0 = scmp.ne.s32.totalorder %s157_s1, %s56_s13  ;;  %s18_s10 = int_to_ptr.vmem [resolvable:$true] %s17_s10 }
   0x3   :  { %p60_p1 = scmp.lt.u32.totalorder %s56_s13, %s157_s1 }
   0x5   :  { %p62_p2 = pnand %p60_p1, %p57_p0 }
   0x7   :  { %65 = shalt.err (!%p62_p2)
}
   0x8   :  { %s66_s18 = scalar_lea.vmem %s18_s10, 256  ;;  %p71_p4 = scmp.lt.s32.totalorder %s18_s10, %s18_s10 }
   0x9   :  { %p67_p3 = scmp.ne.s32.totalorder %s18_s10, %s66_s18  ;;  %p72_p5 = scmp.lt.s32.totalorder %s66_s18, %s66_s18 }
   0xb   :  { %p73_p6 = por %p72_p5, %p71_p4 }
   0xd   :  { %p74_p7 = pnand %p73_p6, %p67_p3 }
   0xf   :  { %77 = shalt.err (!%p74_p7)
}
  0x10   :  { %s105_s19 = smov 128   ;;  %s106_s20 = smov 8  }
  0x11   :  { %23 = dma.hbm_to_vmem [thread:$0]  %s157_s1, 256, %s18_s10, [#allocation4], %s105_s19, %s105_s19, %s106_s20  }
  0x12   :  { %100 = dma.done.wait [#allocation4], 256  }
  0x13   :  { %101 = vsyncadd [#allocation4], 4294967040  ;;  %v30_v0 = vstv %s156_s0  ;;  %s107_s25 = smov [#allocation6]   ;;  %v28_v1 = vld [vmem:[#allocation3] sm:$0xff]  ;;  %v29_v2 = vld [vmem:[#allocation3 + $0x8] sm:$0xff] }
  0x14   :  { %s40_s26 = sshll.u32 %s107_s25, 4  ;;  %v31_v3 = vmul.f32 %v30_v0, %v28_v1  ;;  %v32_v4 = vmul.f32 %v30_v0, %v29_v2  ;;  %s41_s26 = int_to_ptr.vmem [resolvable:$true] %s40_s26 }
  0x15   :  { %s78_s27 = scalar_lea.vmem %s41_s26, 256  ;;  %p83_p9 = scmp.lt.s32.totalorder %s41_s26, %s41_s26 }
  0x16   :  { %33 = vst [vmem:[#allocation6] sm:$0xff] %v31_v3  ;;  %34 = vst [vmem:[#allocation6 + $0x8] sm:$0xff] %v32_v4  ;;  %p79_p8 = scmp.ne.s32.totalorder %s41_s26, %s78_s27  ;;  %p84_p10 = scmp.lt.s32.totalorder %s78_s27, %s78_s27 }
  0x18   :  { %p85_p11 = por %p84_p10, %p83_p9 }
  0x1a   :  { %p86_p12 = pnand %p85_p11, %p79_p8 }
  0x1c   :  { %89 = shalt.err (!%p86_p12)
}
  0x1d   :  { %s90_s0 = scalar_lea.hbm %s158_s2, 256 }
  0x1e   :  { %p91_p13 = scmp.ne.s32.totalorder %s158_s2, %s90_s0  ;;  %p94_p0 = scmp.lt.u32.totalorder %s90_s0, %s158_s2 }
  0x20   :  { %p96_p1 = pnand %p94_p0, %p91_p13 }
  0x22   :  { %99 = shalt.err (!%p96_p1)
}
  0x23   :  { %46 = dma.vmem_to_hbm [thread:$0]  %s41_s26, 256, %s158_s2, [#allocation5], %s105_s19, %s105_s19, %s106_s20  }
  0x24   :  { %102 = dma.done.wait [#allocation5], 256  }
  0x25   :  { %103 = vsyncadd [#allocation5], 4294967040 }
  0x26   :  { %50 = vsyncpa [#allocation4], 1 }
  0x27   :  { %51 = vsyncpa [#allocation5], 1 }

</bundles_post_ra>
